<compile_context>
chip_gen: v7x
topology: tpu7x:2x2x1
jax: 0.10.0
libtpu: 0.0.40
codegen_flags: <defaults>
</compile_context>

<pallas_src>
import functools
import math

import jax
import jax.numpy as jnp
from jax.experimental import pallas as pl
from jax.experimental.pallas import tpu as pltpu


# ----------------------------------------------------------------------------
# Helpers
# ----------------------------------------------------------------------------
def _pick_tile(dim, target, align):
    """Largest `align`-multiple divisor of `dim` that is <= target.

    Falls back to the largest plain divisor <= target, never to the full dim
    (unless dim <= target, which is always legal)."""
    if dim <= target:
        return dim
    t = max((target // align) * align, align)
    for cand in range(t, 0, -align):
        if dim % cand == 0:
            return cand
    for cand in range(min(target, dim), 0, -1):
        if dim % cand == 0:
            return cand
    return dim


@functools.lru_cache(maxsize=1)
def _vmem_limit_bytes():
    """~3/4 of physical VMEM: ~96 MiB on v5e/v6e (128 MiB), ~48 MiB on v7x (64 MiB)."""
    try:
        info = pltpu.get_tpu_info()
        cap = getattr(info, "vmem_capacity_bytes", None)
        if cap:
            return int(min(cap * 3 // 4, 100 * 1024 * 1024))
    except Exception:
        pass
    return 48 * 1024 * 1024  # safe on every generation


# ----------------------------------------------------------------------------
# Kernel 1: tiled linear projection  y = x @ W_t + b,  W_t = W.T with shape (K, N)
# ----------------------------------------------------------------------------
def _linear_kernel(x_ref, w_ref, b_ref, o_ref, acc_ref):
    k = pl.program_id(2)

    @pl.when(k == 0)
    def _init():
        # Fold the bias into the accumulator init (no extra add at finalize).
        acc_ref[...] = jnp.broadcast_to(b_ref[...], acc_ref.shape).astype(jnp.float32)

    # Default MXU precision; f32 accumulation.
    acc_ref[...] += jnp.dot(x_ref[...], w_ref[...], preferred_element_type=jnp.float32)

    @pl.when(k == pl.num_programs(2) - 1)
    def _finalize():
        o_ref[...] = acc_ref[...].astype(o_ref.dtype)


def pallas_linear(x2d, w_t, b, *, out_dtype=None, tm=512, tn=512, tk=512):
    """x2d: (M, K), w_t: (K, N) (already transposed), b: (N,) f32 -> (M, N)."""
    M, K = x2d.shape
    K2, N = w_t.shape
    assert K == K2
    out_dtype = out_dtype or x2d.dtype
    tm = _pick_tile(M, tm, 8)
    tn = _pick_tile(N, tn, 128)
    tk = _pick_tile(K, tk, 128)
    grid = (M // tm, N // tn, K // tk)

    return pl.pallas_call(
        _linear_kernel,
        out_shape=jax.ShapeDtypeStruct((M, N), out_dtype),
        grid=grid,
        in_specs=[
            pl.BlockSpec((tm, tk), lambda i, j, k: (i, k)),
            pl.BlockSpec((tk, tn), lambda i, j, k: (k, j)),
            pl.BlockSpec((1, tn), lambda i, j, k: (0, j)),
        ],
        out_specs=pl.BlockSpec((tm, tn), lambda i, j, k: (i, j)),
        scratch_shapes=[pltpu.VMEM((tm, tn), jnp.float32)],
        compiler_params=pltpu.CompilerParams(
            dimension_semantics=("parallel", "parallel", "arbitrary"),
            vmem_limit_bytes=_vmem_limit_bytes(),
        ),
    )(x2d, w_t, b.reshape(1, N).astype(jnp.float32))


# ----------------------------------------------------------------------------
# Kernel 2: per-(batch, q-tile, head) attention with lane-dense (S, Dh) blocks.
#   grid = (B, num_q_tiles, H); B and q-tiles parallel, heads innermost
#   "arbitrary" so the head-averaged probabilities accumulate in the resident
#   (tq, S) output block.
# ----------------------------------------------------------------------------
def _attn_kernel(q_ref, k_ref, v_ref, ctx_ref, pavg_ref, *, scale, inv_heads):
    h = pl.program_id(2)

    # q_ref: (tq, Dh), k_ref/v_ref: (S, Dh) -- leading (B,H) dims squeezed.
    # q @ k^T without materializing a transpose: contract last dims of both.
    s = jax.lax.dot_general(
        q_ref[...], k_ref[...], (((1,), (1,)), ((), ())),
        preferred_element_type=jnp.float32) * scale               # (tq, S) f32

    # Numerically-stable softmax in f32 (exact normalization: rows sum to 1).
    s = s - jnp.max(s, axis=-1, keepdims=True)
    p = jnp.exp(s)
    p = p * pl.reciprocal(jnp.sum(p, axis=-1, keepdims=True), approx=False)

    ctx = jnp.dot(p.astype(v_ref.dtype), v_ref[...],
                  preferred_element_type=jnp.float32)              # (tq, Dh)
    ctx_ref[...] = ctx.astype(ctx_ref.dtype)                       # lane-dense store

    # Head-averaged attention weights, accumulated across the arbitrary H axis.
    @pl.when(h == 0)
    def _init():
        pavg_ref[...] = jnp.zeros_like(pavg_ref)

    pavg_ref[...] += p * inv_heads


def pallas_attention(q, k, v, *, tq_target=256):
    """q, k, v: (B, H, S, Dh) -> (ctx (B,H,S,Dh), head-averaged probs (B,S,S) f32)."""
    B, H, S, Dh = q.shape
    tq = _pick_tile(S, tq_target, 8)
    nq = S // tq
    kernel = functools.partial(
        _attn_kernel, scale=1.0 / math.sqrt(Dh), inv_heads=1.0 / H)

    return pl.pallas_call(
        kernel,
        out_shape=(
            jax.ShapeDtypeStruct((B, H, S, Dh), q.dtype),
            jax.ShapeDtypeStruct((B, S, S), jnp.float32),
        ),
        grid=(B, nq, H),
        in_specs=[
            pl.BlockSpec((None, None, tq, Dh), lambda b, i, h: (b, h, i, 0)),
            pl.BlockSpec((None, None, S, Dh), lambda b, i, h: (b, h, 0, 0)),
            pl.BlockSpec((None, None, S, Dh), lambda b, i, h: (b, h, 0, 0)),
        ],
        out_specs=(
            pl.BlockSpec((None, None, tq, Dh), lambda b, i, h: (b, h, i, 0)),
            pl.BlockSpec((None, tq, S), lambda b, i, h: (b, i, 0)),
        ),
        compiler_params=pltpu.CompilerParams(
            dimension_semantics=("parallel", "parallel", "arbitrary"),
            vmem_limit_bytes=_vmem_limit_bytes(),
        ),
    )(q, k, v)


# ----------------------------------------------------------------------------
# Module wrapper
# ----------------------------------------------------------------------------
def multi_head_self_attention(x, params, num_heads, *, compute_dtype=jnp.float32):
    """x: (B, S, E). Returns (attn_output (B,S,E), attn_weights (B,S,S) f32)."""
    in_w, in_b, out_w, out_b = params
    B, S, E = x.shape
    Dh = E // num_heads
    out_dtype = x.dtype

    # Cast operands ONCE in the wrapper (bf16 path halves HBM traffic / VMEM).
    xc = x.astype(compute_dtype).reshape(B * S, E)
    in_w_t = in_w.T.astype(compute_dtype)      # (E, 3E), pre-transposed once
    out_w_t = out_w.T.astype(compute_dtype)    # (E, E)

    # 1) Fused QKV projection (tiled Pallas matmul).
    qkv = pallas_linear(xc, in_w_t, in_b, out_dtype=compute_dtype)   # (B*S, 3E)

    # 2) One-time layout plumbing to lane-dense per-head tiles: (3, B, H, S, Dh).
    qkv = qkv.reshape(B, S, 3, num_heads, Dh).transpose(2, 0, 3, 1, 4)
    q, k, v = qkv[0], qkv[1], qkv[2]

    # 3) Attention: heads on the grid, head-averaged weights accumulated in-kernel.
    ctx, attn_weights = pallas_attention(q, k, v)                    # (B,H,S,Dh), (B,S,S)

    # 4) Concat heads + output projection (tiled Pallas matmul).
    ctx2d = ctx.transpose(0, 2, 1, 3).reshape(B * S, E)
    out = pallas_linear(ctx2d, out_w_t, out_b, out_dtype=out_dtype).reshape(B, S, E)
    return out, attn_weights


# ----------------------------------------------------------------------------
# Pure-JAX reference (matches nn.MultiheadAttention default eval path),
# computed at HIGHEST matmul precision so it is a trustworthy baseline.
# ----------------------------------------------------------------------------
def _reference(x, params, num_heads):
    in_w, in_b, out_w, out_b = params
    B, S, E = x.shape
    Dh = E // num_heads
    hp = jax.lax.Precision.HIGHEST
    qkv = jnp.dot(x.reshape(B * S, E), in_w.T, precision=hp).reshape(B, S, 3 * E) + in_b
    q, k, v = jnp.split(qkv, 3, axis=-1)
    q = q.reshape(B, S, num_heads, Dh).transpose(0, 2, 1, 3)
    k = k.reshape(B, S, num_heads, Dh).transpose(0, 2, 1, 3)
    v = v.reshape(B, S, num_heads, Dh).transpose(0, 2, 1, 3)
    s = jnp.einsum("bhqd,bhkd->bhqk", q, k, precision=hp) / math.sqrt(Dh)
    p = jax.nn.softmax(s, axis=-1)
    ctx = jnp.einsum("bhqk,bhkd->bhqd", p, v, precision=hp)
    ctx = ctx.transpose(0, 2, 1, 3).reshape(B, S, E)
    out = jnp.dot(ctx.reshape(B * S, E), out_w.T, precision=hp).reshape(B, S, E) + out_b
    return out, p.mean(axis=1)


def _make_params(key, E):
    k1, k2, k3, k4 = jax.random.split(key, 4)
    in_proj_weight = jax.random.normal(k1, (3 * E, E), jnp.float32) * 0.05
    in_proj_bias = jax.random.normal(k2, (3 * E,), jnp.float32) * 0.05
    out_proj_weight = jax.random.normal(k3, (E, E), jnp.float32) * 0.05
    out_proj_bias = jax.random.normal(k4, (E,), jnp.float32) * 0.05
    return (in_proj_weight, in_proj_bias, out_proj_weight, out_proj_bias)


if __name__ == "__main__":
    key = jax.random.PRNGKey(0)

    # ---- Small demo shape (batch=2, seq=8, hidden=32, heads=4, dropout=0.0) ----
    B, S, E, H = 2, 8, 32, 4
    kp, kx, krest = jax.random.split(key, 3)
    params = _make_params(kp, E)
    x = jax.random.normal(kx, (B, S, E), jnp.float32)

    out, attn_w = multi_head_self_attention(x, params, H)
    jax.block_until_ready((out, attn_w))
    ref_out, ref_w = _reference(x, params, H)
    assert out.shape == (B, S, E) and attn_w.shape == (B, S, S)
    # Kernel dots run at default MXU precision (bf16 operands / f32 accum) vs a
    # HIGHEST-precision reference, hence the ~bf16-level tolerance.
    assert jnp.allclose(out, ref_out, atol=3e-2, rtol=3e-2)
    assert jnp.allclose(attn_w, ref_w, atol=2e-2, rtol=2e-2)

    # bf16 operand path (operands cast once in the wrapper; f32 accum / f32 softmax).
    out_bf, attn_w_bf = multi_head_self_attention(x, params, H, compute_dtype=jnp.bfloat16)
    jax.block_until_ready((out_bf, attn_w_bf))
    assert jnp.allclose(out_bf, ref_out, atol=8e-2, rtol=8e-2)
    assert jnp.allclose(attn_w_bf, ref_w, atol=5e-2, rtol=5e-2)

    # ---- Larger shape exercising multi-block grids (heads / q-tiles / K-tiles) ----
    B2, S2, E2, H2 = 2, 128, 256, 4
    kp2, kx2 = jax.random.split(krest, 2)
    params2 = _make_params(kp2, E2)
    x2 = jax.random.normal(kx2, (B2, S2, E2), jnp.float32)
    out2, attn_w2 = multi_head_self_attention(x2, params2, H2)
    jax.block_until_ready((out2, attn_w2))
    ref_out2, ref_w2 = _reference(x2, params2, H2)
    assert jnp.allclose(out2, ref_out2, atol=3e-2, rtol=3e-2)
    assert jnp.allclose(attn_w2, ref_w2, atol=2e-2, rtol=2e-2)

    print("KERNEL_OK")
</pallas_src>

<mosaic_0001>
module attributes {stable_mosaic.version = 11 : i64} {
  func.func @_linear_kernel(%arg0: i32, %arg1: i32, %arg2: i32, %arg3: memref<16x32xf32, #tpu.memory_space<vmem>>, %arg4: memref<32x96xf32, #tpu.memory_space<vmem>>, %arg5: memref<1x96xf32, #tpu.memory_space<vmem>>, %arg6: memref<16x96xf32, #tpu.memory_space<vmem>>, %arg7: memref<16x96xf32, #tpu.memory_space<vmem>>) attributes {dimension_semantics = [#tpu.dimension_semantics<parallel>, #tpu.dimension_semantics<parallel>, #tpu.dimension_semantics<arbitrary>], iteration_bounds = array<i64: 1, 1, 1>, scalar_prefetch = 0 : i64, scratch_operands = 1 : i64, tpu.core_type = #tpu.core_type<tc>, window_params = [{transform_indices = @transform_0, window_bounds = array<i64: 16, 32>}, {transform_indices = @transform_1, window_bounds = array<i64: 32, 96>}, {transform_indices = @transform_2, window_bounds = array<i64: 1, 96>}, {transform_indices = @transform_3, window_bounds = array<i64: 16, 96>}]} {
    %c0_i32 = arith.constant 0 : i32
    %0 = arith.cmpi eq, %arg2, %c0_i32 : i32
    %1 = arith.extui %0 : i1 to i32
    %c0_i32_0 = arith.constant 0 : i32
    %2 = arith.cmpi ne, %1, %c0_i32_0 : i32
    scf.if %2 {
      %c0_10 = arith.constant 0 : index
      %c0_11 = arith.constant 0 : index
      %12 = vector.load %arg5[%c0_10, %c0_11] : memref<1x96xf32, #tpu.memory_space<vmem>>, vector<1x96xf32>
      %13 = vector.shape_cast %12 : vector<1x96xf32> to vector<1x96xf32>
      %14 = vector.broadcast %13 : vector<1x96xf32> to vector<16x96xf32>
      %c0_12 = arith.constant 0 : index
      %c0_13 = arith.constant 0 : index
      %15 = vector.load %arg7[%c0_12, %c0_13] : memref<16x96xf32, #tpu.memory_space<vmem>>, vector<16x96xf32>
      tpu.vector_store %arg7[%c0_12, %c0_13], %14 {strides = array<i32>} : memref<16x96xf32, #tpu.memory_space<vmem>>, vector<16x96xf32>,
    } else {
    }
    %c0 = arith.constant 0 : index
    %c0_1 = arith.constant 0 : index
    %3 = vector.load %arg7[%c0, %c0_1] : memref<16x96xf32, #tpu.memory_space<vmem>>, vector<16x96xf32>
    %c0_2 = arith.constant 0 : index
    %c0_3 = arith.constant 0 : index
    %4 = vector.load %arg3[%c0_2, %c0_3] : memref<16x32xf32, #tpu.memory_space<vmem>>, vector<16x32xf32>
    %c0_4 = arith.constant 0 : index
    %c0_5 = arith.constant 0 : index
    %5 = vector.load %arg4[%c0_4, %c0_5] : memref<32x96xf32, #tpu.memory_space<vmem>>, vector<32x96xf32>
    %cst = arith.constant dense<0.000000e+00> : vector<16x96xf32>
    %6 = tpu.matmul %4, %5, %cst {dimension_numbers = #tpu.dot_dimension_numbers<[1], [0], [0], [1], [0, 0, 1, 1], [], []>} : vector<16x32xf32>, vector<32x96xf32>, vector<16x96xf32> -> vector<16x96xf32>
    %7 = arith.addf %3, %6 : vector<16x96xf32>
    %c0_6 = arith.constant 0 : index
    %c0_7 = arith.constant 0 : index
    %8 = vector.load %arg7[%c0_6, %c0_7] : memref<16x96xf32, #tpu.memory_space<vmem>>, vector<16x96xf32>
    tpu.vector_store %arg7[%c0_6, %c0_7], %7 {strides = array<i32>} : memref<16x96xf32, #tpu.memory_space<vmem>>, vector<16x96xf32>,
    %c0_i32_8 = arith.constant 0 : i32
    %9 = arith.cmpi eq, %arg2, %c0_i32_8 : i32
    %10 = arith.extui %9 : i1 to i32
    %c0_i32_9 = arith.constant 0 : i32
    %11 = arith.cmpi ne, %10, %c0_i32_9 : i32
    scf.if %11 {
      %c0_10 = arith.constant 0 : index
      %c0_11 = arith.constant 0 : index
      %12 = vector.load %arg7[%c0_10, %c0_11] : memref<16x96xf32, #tpu.memory_space<vmem>>, vector<16x96xf32>
      %c0_12 = arith.constant 0 : index
      %c0_13 = arith.constant 0 : index
      %13 = vector.load %arg6[%c0_12, %c0_13] : memref<16x96xf32, #tpu.memory_space<vmem>>, vector<16x96xf32>
      tpu.vector_store %arg6[%c0_12, %c0_13], %12 {strides = array<i32>} : memref<16x96xf32, #tpu.memory_space<vmem>>, vector<16x96xf32>,
    } else {
    }
    return
  }
  func.func @transform_0(%arg0: i32, %arg1: i32, %arg2: i32) -> (i32, i32) {
    %c0_i32 = arith.constant 0 : i32
    return %arg0, %arg2 : i32, i32
  }
  func.func @transform_1(%arg0: i32, %arg1: i32, %arg2: i32) -> (i32, i32) {
    %c0_i32 = arith.constant 0 : i32
    return %arg2, %arg1 : i32, i32
  }
  func.func @transform_2(%arg0: i32, %arg1: i32, %arg2: i32) -> (i32, i32) {
    %c0_i32 = arith.constant 0 : i32
    %c0_i32_0 = arith.constant 0 : i32
    return %c0_i32, %arg1 : i32, i32
  }
  func.func @transform_3(%arg0: i32, %arg1: i32, %arg2: i32) -> (i32, i32) {
    %c0_i32 = arith.constant 0 : i32
    return %arg0, %arg1 : i32, i32
  }
}

</mosaic_0001>

<bundles_post_ra>
// kernel: tpu_custom_call.1
= control target key start
LH: loop header
LB: loop body
LE: loop exit
PB: predicated region body
PF: predicated region fallthrough
CT: control target
= control target key end

     0   :  { %8 = vsyncpa [#allocation4], 0  ;;  %s363_s0 = inlined_call_operand.hbm [shape: f32[16,32], index: 0, kind: input, shape index: {}]   ;;  %s364_s1 = inlined_call_operand.hbm [shape: f32[32,96], index: 1, kind: input, shape index: {}]   ;;  %s365_s2 = inlined_call_operand.vmem [shape: f32[1,96], index: 2, kind: input, shape index: {}]   ;;  %s366_s3 = inlined_call_operand.hbm [shape: f32[16,96], index: 3, kind: output, shape index: {}]  }
   0x1   :  { %9 = vsyncpa [#allocation7], 0 }
   0x2   :  { %10 = vsyncpa [#allocation5], 0  ;;  %s282_s12 = smov [#allocation3]   ;;  %s210_s16 = scalar_lea.hbm %s363_s0, 256 }
   0x3   :  { %s16_s13 = sshll.u32 %s282_s12, 4  ;;  %p211_p0 = scmp.ne.s32.totalorder %s363_s0, %s210_s16  ;;  %s17_s13 = int_to_ptr.vmem [resolvable:$true] %s16_s13 }
   0x4   :  { %p214_p1 = scmp.lt.u32.totalorder %s210_s16, %s363_s0 }
   0x6   :  { %p216_p2 = pnand %p214_p1, %p211_p0 }
   0x8   :  { %219 = shalt.err (!%p216_p2)
}
   0x9   :  { %s220_s21 = scalar_lea.vmem %s17_s13, 256  ;;  %p225_p4 = scmp.lt.s32.totalorder %s17_s13, %s17_s13 }
   0xa   :  { %p221_p3 = scmp.ne.s32.totalorder %s17_s13, %s220_s21  ;;  %p226_p5 = scmp.lt.s32.totalorder %s220_s21, %s220_s21 }
   0xc   :  { %p227_p6 = por %p226_p5, %p225_p4 }
   0xe   :  { %p228_p7 = pnand %p227_p6, %p221_p3 }
  0x10   :  { %231 = shalt.err (!%p228_p7)
}
  0x11   :  { %s283_s22 = smov 128   ;;  %s284_s23 = smov 8  }
  0x12   :  { %22 = dma.hbm_to_vmem [thread:$0]  %s363_s0, 256, %s17_s13, [#allocation4], %s283_s22, %s283_s22, %s284_s23  }
  0x13   :  { %s285_s26 = smov [#allocation6]   ;;  %s232_s30 = scalar_lea.hbm %s364_s1, 512 }
  0x14   :  { %s28_s27 = sshll.u32 %s285_s26, 4  ;;  %p233_p8 = scmp.ne.s32.totalorder %s364_s1, %s232_s30  ;;  %s29_s27 = int_to_ptr.vmem [resolvable:$true] %s28_s27 }
  0x15   :  { %p236_p9 = scmp.lt.u32.totalorder %s232_s30, %s364_s1 }
  0x17   :  { %p238_p10 = pnand %p236_p9, %p233_p8 }
  0x19   :  { %241 = shalt.err (!%p238_p10)
}
  0x1a   :  { %s242_s8 = scalar_lea.vmem %s29_s27, 512  ;;  %p247_p12 = scmp.lt.s32.totalorder %s29_s27, %s29_s27 }
  0x1b   :  { %p243_p11 = scmp.ne.s32.totalorder %s29_s27, %s242_s8  ;;  %p248_p13 = scmp.lt.s32.totalorder %s242_s8, %s242_s8 }
  0x1d   :  { %p249_p0 = por %p248_p13, %p247_p12 }
  0x1f   :  { %p250_p1 = pnand %p249_p0, %p243_p11 }
  0x21   :  { %253 = shalt.err (!%p250_p1)
}
  0x22   :  { %34 = dma.hbm_to_vmem [thread:$0]  %s364_s1, 512, %s29_s27, [#allocation7], %s283_s22, %s283_s22, %s284_s23  }
  0x23   :  { %276 = dma.done.wait [#allocation4], 256  }
  0x24   :  { %277 = vsyncadd [#allocation4], 4294967040 }
  0x25   :  { %278 = dma.done.wait [#allocation7], 512  }
  0x26   :  { %279 = vsyncadd [#allocation7], 4294966784  ;;  %vm65_vm0 = vcmask 261120   ;;  %v61_v0 = vld [vmem:[#allocation6] sm:$0xff]  ;;  %v62_v1 = vld [vmem:[#allocation6 + $0x8] sm:$0xff]  ;;  %vm54_vm1 = vcmask 785408  }
  0x27   :  { %v63_v2 = vld [vmem:[#allocation6 + $0x10] sm:$0xff]  ;;  %v197_v3 = vpack.c.bf16 %v62_v1, %v61_v0  ;;  %v64_v4 = vld [vmem:[#allocation6 + $0x18] sm:$0xff]  ;;  %v177_v7 = vld [vmem:[%s365_s2] ss:$0 sm:$0xff]  ;;  %s286_s1 = smov [#allocation8]  }
  0x28   :  { %v59_v5 = vld [vmem:[#allocation3] sm:$0xff]  ;;  %v201_v6 = vpack.c.bf16 %v64_v4, %v63_v2  ;;  %56 = vst.msk [vmem:[#allocation2 + $0x8] sm:$0xff] %vm54_vm1, %v177_v7  ;;  %55 = vst.msk [vmem:[#allocation2] sm:$0xff] %vm54_vm1, %v177_v7  ;;  %v60_v8 = vld [vmem:[#allocation3 + $0x8] sm:$0xff]  ;;  %s164_s2 = sshll.u32 %s286_s1, 4  ;;  %s165_s2 = int_to_ptr.vmem [resolvable:$true] %s164_s2 }
  0x29   :  { %194 = vmatprep.mubr.msk.f32.mxu0 %vm65_vm0, %v59_v5  ;;  %198 = vmatprep.subr.bf16.mxu0 %v197_v3  ;;  %s254_s12 = scalar_lea.vmem %s165_s2, 256  ;;  %p259_p3 = scmp.lt.s32.totalorder %s165_s2, %s165_s2 }
  0x2a   :  { %200 = vmatpush3.bf16.msra.mxu0 %v197_v3  ;;  %p255_p2 = scmp.ne.s32.totalorder %s165_s2, %s254_s12  ;;  %p260_p4 = scmp.lt.s32.totalorder %s254_s12, %s254_s12 }
  0x2b   :  { %202 = vmatprep.subr.bf16.mxu0 %v201_v6 }
  0x2c   :  { %p261_p5 = por %p260_p4, %p259_p3 }
  0x2e   :  { %204 = vmatpush3.bf16.msra.mxu0 %v201_v6  ;;  %p262_p6 = pnand %p261_p5, %p255_p2 }
  0x2f   :  { %v58_v9 = vld [vmem:[#allocation2 + $0x8] sm:$0xff]  ;;  %v57_v10 = vld [vmem:[#allocation2] sm:$0xff] }
  0x31   :  { %195 = vmatmul.mubr.msk.f32.vlgmr.msra.gmra.mrb[0].mxu0 %vm65_vm0, %v60_v8 }
 0x104   :  { %v196_v11 = vpop.f32.mrb[0].mxu0 }
 0x105   :  { %v148_v12 = vadd.f32 %v196_v11, %v58_v9  ;;  %v138_v13 = vpop.f32.mrb[1].mxu0 }
 0x106   :  { %v147_v14 = vadd.f32 %v138_v13, %v57_v10 }
 0x107   :  { %151 = vst.msk [vmem:[#allocation2 + $0x8] sm:$0xff] %vm54_vm1, %v148_v12 }
 0x108   :  { %150 = vst.msk [vmem:[#allocation2] sm:$0xff] %vm54_vm1, %v147_v14 }
 0x10e   :  { %v156_v15 = vld [vmem:[#allocation2 + $0x8] sm:$0xff] }
 0x10f   :  { %v155_v16 = vld [vmem:[#allocation2] sm:$0xff]  ;;  %158 = vst.msk [vmem:[#allocation8 + $0x8] sm:$0xff] %vm54_vm1, %v156_v15 }
 0x110   :  { %157 = vst.msk [vmem:[#allocation8] sm:$0xff] %vm54_vm1, %v155_v16 }
 0x111   :  { %265 = shalt.err (!%p262_p6)
}
 0x112   :  { %s266_s15 = scalar_lea.hbm %s366_s3, 256 }
 0x113   :  { %p267_p7 = scmp.ne.s32.totalorder %s366_s3, %s266_s15  ;;  %p270_p8 = scmp.lt.u32.totalorder %s266_s15, %s366_s3 }
 0x115   :  { %p272_p9 = pnand %p270_p8, %p267_p7 }
 0x117   :  { %275 = shalt.err (!%p272_p9)
}
 0x118   :  { %170 = dma.vmem_to_hbm [thread:$0]  %s165_s2, 256, %s366_s3, [#allocation5], %s283_s22, %s283_s22, %s284_s23  }
 0x119   :  { %280 = dma.done.wait [#allocation5], 256  }
 0x11a   :  { %281 = vsyncadd [#allocation5], 4294967040 }
 0x11b   :  { %174 = vsyncpa [#allocation4], 1 }
 0x11c   :  { %175 = vsyncpa [#allocation7], 1 }
 0x11d   :  { %176 = vsyncpa [#allocation5], 1 }

</bundles_post_ra>
